<compile_context>
chip_gen: v5e
topology: v5e:2x2
jax: 0.10.0
libtpu: 0.0.40
codegen_flags: <defaults>
</compile_context>

<pallas_src>
import functools

import jax
import jax.numpy as jnp
from jax import lax
from jax.experimental import pallas as pl
from jax.experimental.pallas import tpu as pltpu


def _cdiv(a, b):
    return -(-a // b)


def _round_up(v, m):
    return ((v + m - 1) // m) * m


def _vmem_config():
    """(tile VMEM budget, stretch budget, vmem_limit_bytes) per generation."""
    phys = None
    try:
        phys = getattr(pltpu.get_tpu_info(), "vmem_capacity_bytes", None)
    except Exception:
        phys = None
    if not phys:
        # Unknown part (or interpret mode): assume the smallest modern VMEM
        # (v7x class, 64 MiB) and stay conservative.
        return 12 << 20, 20 << 20, 48 << 20
    if phys >= (100 << 20):
        # v5e / v6e class (128 MiB physical VMEM).
        return 24 << 20, 32 << 20, 96 << 20
    # v7x class (64 MiB physical): keep headroom, but allow up to ~1/3 of VMEM
    # when the conservative budget would make tiles too narrow (< 512 lanes).
    return (max(4 << 20, phys // 5),
            max(8 << 20, phys // 3),
            max(32 << 20, phys - (16 << 20)))


def _num_tensorcores():
    """Best-effort TensorCores-per-chip count (v7x has 2); defaults to 1."""
    try:
        info = pltpu.get_tpu_info()
        for attr in ("num_cores", "core_count", "num_tensorcores",
                     "tensorcore_count"):
            v = getattr(info, attr, None)
            if isinstance(v, int) and v >= 1:
                return v
    except Exception:
        pass
    try:
        dev = jax.devices()[0]
        for attr in ("num_cores", "core_count"):
            v = getattr(dev, attr, None)
            if isinstance(v, int) and v >= 1:
                return v
    except Exception:
        pass
    return 1


def _plan_tiles(N, D, K_pad, x_itemsize, budget, budget_hi, split, tile_n_cap):
    """Returns (tile_n, n_tiles, split) with n_tiles % split == 0, every tile
    holding at least one valid pixel, and n_tiles * tile_n >= N."""
    def max_tn(budget_bytes):
        # Per lane column: double-buffered X block (+ masked tail copy) plus
        # the f32 (K_pad, TN) matmul / softmax intermediates.
        per_n = 3 * D * x_itemsize + 4 * D + 6 * K_pad * 4 + 64
        t = (int(budget_bytes) // per_n // 128) * 128
        return max(128, min(t, 2048))   # ~85%+ of HBM roofline by 512-1024 lanes

    if tile_n_cap is None:
        cap = max_tn(budget)
        if cap < 512:
            cap = max_tn(budget_hi)     # v7x + large D: spend more VMEM
    else:
        cap = int(tile_n_cap)
        if cap < N:
            cap = max(128, (cap // 128) * 128)

    # Small inputs: one full-row tile (block equal to the full dim is allowed).
    if split == 1 and N <= cap:
        return N, 1, 1

    n_tiles = _round_up(max(1, _cdiv(N, cap)), split)
    tn = _round_up(_cdiv(N, n_tiles), 128)            # balanced tiles
    while tn > cap and tn > 128:
        n_tiles += split
        tn = _round_up(_cdiv(N, n_tiles), 128)

    if (n_tiles - 1) * tn >= N:
        # A trailing tile would be entirely padding (tiny N vs. the split):
        # drop the core split rather than handle fully-empty tiles in-kernel.
        if split > 1:
            return _plan_tiles(N, D, K_pad, x_itemsize, budget, budget_hi, 1,
                               tile_n_cap)
        while n_tiles > 1 and (n_tiles - 1) * tn >= N:
            n_tiles -= 1
    return tn, n_tiles, split


def _encoding_kernel(x_ref, cs_ref, c_ref, s2_ref, sc2b_ref, e_ref, asum_ref,
                     *, n_total, tile_n, tiles_per_slab, needs_mask):
    # x_ref   : (1, D, TN)       X tile, native dtype, features-major layout
    # cs_ref  : (K_pad, D)       2*scale_k^2*C_k        (0 on pad rows), X dtype
    # c_ref   : (K_pad, D)       raw codewords, f32     (0 on pad rows)
    # s2_ref  : (K_pad, 1)       scale_k^2              (0 on pad rows), f32
    # sc2b_ref: (K_pad, 1)       scale_k^2*||C_k||^2    (-1e30 on pad rows), f32
    # e_ref   : (1, 1, K_pad, D) output block, revisited across N and used as
    #                            the f32 accumulator of A^T X
    # asum_ref: (K_pad, 1)       f32 accumulator for sum_n A
    s_idx = pl.program_id(1)
    n_idx = pl.program_id(2)
    n_last = pl.num_programs(2) - 1

    @pl.when(n_idx == 0)
    def _init():
        e_ref[...] = jnp.zeros(e_ref.shape, e_ref.dtype)
        asum_ref[...] = jnp.zeros(asum_ref.shape, asum_ref.dtype)

    def tile_update(mask_tail):
        x = x_ref[0]                                                 # (D, TN)
        lane_ok = None
        if mask_tail:
            # Zero the pixel lanes that run past N (globally last tile only).
            start = (s_idx * tiles_per_slab + n_idx) * tile_n
            lane_ok = (lax.broadcasted_iota(jnp.int32, (1, tile_n), 1)
                       < (n_total - start))
            x = jnp.where(lane_ok, x, jnp.zeros_like(x))

        xf = x.astype(jnp.float32)
        x2 = jnp.sum(xf * xf, axis=0, keepdims=True)                 # (1, TN)
        # 2*s2_k*(C_k . x_n) on the MXU (scale folded into the codewords).
        cx = lax.dot_general(cs_ref[...], x, (((1,), (0,)), ((), ())),
                             preferred_element_type=jnp.float32)     # (K_pad,TN)
        # SL[k,n] = s2_k * ||x_n - C_k||^2   (+ -1e30 bias on padded rows)
        sl = s2_ref[...] * x2 - cx + sc2b_ref[...]

        # Softmax over the codeword (sublane) axis; exact division.
        m = jnp.max(sl, axis=0, keepdims=True)
        p = jnp.exp(sl - m)
        a = p * (1.0 / jnp.sum(p, axis=0, keepdims=True))            # (K_pad,TN)
        if mask_tail:
            a = jnp.where(lane_ok, a, jnp.zeros_like(a))

        # Partial contributions of this N tile:  A^T X  and  sum_n A.
        e_ref[0, 0] += lax.dot_general(a.astype(x.dtype), x,
                                       (((1,), (1,)), ((), ())),
                                       preferred_element_type=jnp.float32)
        asum_ref[...] += jnp.sum(a, axis=1, keepdims=True)

    if needs_mask:
        # Only the globally last tile overhangs N; every other tile skips the
        # (D, TN)/(K_pad, TN) masking selects and the masked X copy.
        is_tail = jnp.logical_and(s_idx == pl.num_programs(1) - 1,
                                  n_idx == n_last)

        @pl.when(jnp.logical_not(is_tail))
        def _full_tile():
            tile_update(False)

        @pl.when(is_tail)
        def _tail_tile():
            tile_update(True)
    else:
        tile_update(False)

    @pl.when(n_idx == n_last)
    def _finalize():
        # E = A^T X - (sum_n A) * C   (f32 codewords for the finalize step)
        e_ref[0, 0] -= asum_ref[...] * c_ref[...]


def encoding_forward(x, codewords, scale, *, tile_n=None, n_split=None):
    """Encoding layer forward.

    x:         (B, D, H, W) or (B, D, N), any float dtype (kept as-is in HBM)
    codewords: (K, D);   scale: (K,)
    returns    (B, K, D) float32
    """
    B = x.shape[0]
    D = x.shape[1]
    K, Dc = codewords.shape
    assert D == Dc, "Encoding layer: channel dim of X must match codewords"

    # NCHW -> (B, D, N) is a contiguous reshape: no transpose, no extra HBM
    # pass over X; the kernel contracts over D directly from this layout.
    if x.ndim == 4:
        x_dn = x.reshape(B, D, -1)
    elif x.ndim == 3:
        x_dn = x
    else:
        raise RuntimeError("Encoding Layer unknown input dims!")
    N = x_dn.shape[2]

    K_pad = _round_up(K, 8)
    c32 = codewords.astype(jnp.float32)
    s2 = scale.astype(jnp.float32) ** 2                              # (K,)
    c2 = jnp.sum(c32 * c32, axis=1)                                  # (K,)

    c_pad = jnp.zeros((K_pad, D), jnp.float32).at[:K].set(c32)
    cs_pad = jnp.zeros((K_pad, D), jnp.float32).at[:K].set(
        2.0 * s2[:, None] * c32).astype(x_dn.dtype)
    s2_col = jnp.zeros((K_pad, 1), jnp.float32).at[:K, 0].set(s2)
    sc2b_col = jnp.full((K_pad, 1), -1e30, jnp.float32).at[:K, 0].set(s2 * c2)

    budget, budget_hi, vmem_limit = _vmem_config()
    if n_split is None:
        cores = min(_num_tensorcores(), 2)
        # v7x: when B alone cannot keep both TensorCores busy, split the N
        # reduction across cores and sum the per-core partials in the wrapper.
        n_split = cores if (cores > 1 and (B % cores) != 0) else 1
    split = max(1, int(n_split))

    tn, n_tiles, split = _plan_tiles(N, D, K_pad, x_dn.dtype.itemsize,
                                     budget, budget_hi, split, tile_n)
    tiles_per_slab = n_tiles // split
    needs_mask = (n_tiles * tn != N)

    kernel = functools.partial(_encoding_kernel, n_total=N, tile_n=tn,
                               tiles_per_slab=tiles_per_slab,
                               needs_mask=needs_mask)

    grid_spec = pltpu.PrefetchScalarGridSpec(
        num_scalar_prefetch=0,
        grid=(B, split, tiles_per_slab),     # N reduction is the trailing axis
        in_specs=[
            # TODO(synk): on 128 MiB-VMEM parts (v5e/v6e) this X spec could use
            # pipeline_mode=pl.Buffered(3) for a few extra % of DMA overlap.
            pl.BlockSpec((1, D, tn),
                         lambda b, s, n: (b, 0, s * tiles_per_slab + n)),
            pl.BlockSpec((K_pad, D), lambda b, s, n: (0, 0)),   # 2*s2*C, X dtype
            pl.BlockSpec((K_pad, D), lambda b, s, n: (0, 0)),   # C, f32
            pl.BlockSpec((K_pad, 1), lambda b, s, n: (0, 0)),   # scale^2
            pl.BlockSpec((K_pad, 1), lambda b, s, n: (0, 0)),   # s2*||C||^2 + bias
        ],
        out_specs=pl.BlockSpec((1, 1, K_pad, D), lambda b, s, n: (b, s, 0, 0)),
        scratch_shapes=[pltpu.VMEM((K_pad, 1), jnp.float32)],   # sum_n A
    )

    itemsize = x_dn.dtype.itemsize
    cost = pl.CostEstimate(
        flops=int(4 * B * N * K_pad * D + B * N * (3 * D + 8 * K_pad)),
        transcendentals=int(B * N * K_pad),
        bytes_accessed=int(B * N * D * itemsize + B * split * K_pad * D * 4
                           + K_pad * (2 * D * 4 + D * itemsize + 8)),
    )

    out_pad = pl.pallas_call(
        kernel,
        out_shape=jax.ShapeDtypeStruct((B, split, K_pad, D), jnp.float32),
        grid_spec=grid_spec,
        compiler_params=pltpu.CompilerParams(
            dimension_semantics=("parallel", "parallel", "arbitrary"),
            vmem_limit_bytes=vmem_limit,
        ),
        cost_estimate=cost,
    )(x_dn, cs_pad, c_pad, s2_col, sc2b_col)

    e = out_pad.sum(axis=1) if split > 1 else out_pad[:, 0]
    return e[:, :K, :] if K_pad != K else e


def _reference(x, codewords, scale):
    """Pure-JAX reference mirroring the PyTorch forward exactly."""
    B, D = x.shape[0], x.shape[1]
    x_bnd = jnp.transpose(x.reshape(B, D, -1), (0, 2, 1))               # (B,N,D)
    diff = x_bnd[:, :, None, :] - codewords[None, None, :, :]           # (B,N,K,D)
    sl = jnp.sum((scale[None, None, :, None] * diff) ** 2, axis=3)      # (B,N,K)
    a = jax.nn.softmax(sl, axis=2)
    return jnp.sum(a[:, :, :, None] * diff, axis=1)                     # (B,K,D)


if __name__ == "__main__":
    key = jax.random.PRNGKey(0)
    ks = jax.random.split(key, 9)
    tol = dict(atol=2e-3, rtol=2e-3)
    D = 32

    # Case 1: NCHW input, B=2, K multiple of 8, N=64 -> single full-row tile.
    B1, K1, H, W = 2, 16, 8, 8
    std1 = 1.0 / (K1 * D) ** 0.5
    cw1 = jax.random.uniform(ks[0], (K1, D), jnp.float32, -std1, std1)
    sc1 = jax.random.uniform(ks[1], (K1,), jnp.float32, -1.0, 0.0)
    x1 = jax.random.normal(ks[2], (B1, D, H, W), jnp.float32)
    out1 = jax.block_until_ready(encoding_forward(x1, cw1, sc1))
    ref1 = _reference(x1, cw1, sc1)
    assert out1.shape == (B1, K1, D)
    assert jnp.allclose(out1, ref1, **tol), "case 1 mismatch vs reference"

    # Case 2: (B, D, N) input, K not a multiple of 8, N=200 with forced
    # 128-wide tiles -> multi-tile N reduction + accumulators, tail-tile pixel
    # mask (last tile only) and the padded-codeword softmax bias.
    B2, K2, N2 = 2, 12, 200
    std2 = 1.0 / (K2 * D) ** 0.5
    cw2 = jax.random.uniform(ks[3], (K2, D), jnp.float32, -std2, std2)
    sc2 = jax.random.uniform(ks[4], (K2,), jnp.float32, -1.0, 0.0)
    x2 = jax.random.normal(ks[5], (B2, D, N2), jnp.float32)
    out2 = jax.block_until_ready(encoding_forward(x2, cw2, sc2, tile_n=128))
    ref2 = _reference(x2, cw2, sc2)
    assert out2.shape == (B2, K2, D)
    assert jnp.allclose(out2, ref2, **tol), "case 2 mismatch vs reference"

    # Case 3: B=1 with a forced 2-way N split (v7x dual-TensorCore path):
    # grid (1, 2, 2), per-slab partial outputs summed in the wrapper,
    # tail mask only on the globally last tile.
    B3, K3, N3 = 1, 10, 400
    std3 = 1.0 / (K3 * D) ** 0.5
    cw3 = jax.random.uniform(ks[6], (K3, D), jnp.float32, -std3, std3)
    sc3 = jax.random.uniform(ks[7], (K3,), jnp.float32, -1.0, 0.0)
    x3 = jax.random.normal(ks[8], (B3, D, N3), jnp.float32)
    out3 = jax.block_until_ready(
        encoding_forward(x3, cw3, sc3, tile_n=128, n_split=2))
    ref3 = _reference(x3, cw3, sc3)
    assert out3.shape == (B3, K3, D)
    assert jnp.allclose(out3, ref3, **tol), "case 3 mismatch vs reference"

    print("KERNEL_OK")
</pallas_src>

<mosaic_0001>
module attributes {stable_mosaic.version = 11 : i64} {
  func.func @_encoding_kernel(%arg0: i32, %arg1: i32, %arg2: i32, %arg3: memref<1x32x64xf32, #tpu.memory_space<vmem>>, %arg4: memref<16x32xf32, #tpu.memory_space<vmem>>, %arg5: memref<16x32xf32, #tpu.memory_space<vmem>>, %arg6: memref<16x1xf32, #tpu.memory_space<vmem>>, %arg7: memref<16x1xf32, #tpu.memory_space<vmem>>, %arg8: memref<1x1x16x32xf32, #tpu.memory_space<vmem>>, %arg9: memref<16x1xf32, #tpu.memory_space<vmem>>) attributes {dimension_semantics = [#tpu.dimension_semantics<parallel>, #tpu.dimension_semantics<parallel>, #tpu.dimension_semantics<arbitrary>], iteration_bounds = array<i64: 2, 1, 1>, scalar_prefetch = 0 : i64, scratch_operands = 1 : i64, tpu.core_type = #tpu.core_type<tc>, window_params = [{transform_indices = @transform_0, window_bounds = array<i64: 1, 32, 64>}, {pipeline_mode = #tpu.pipeline_mode<synchronous>, transform_indices = @transform_1, window_bounds = array<i64: 16, 32>}, {pipeline_mode = #tpu.pipeline_mode<synchronous>, transform_indices = @transform_2, window_bounds = array<i64: 16, 32>}, {pipeline_mode = #tpu.pipeline_mode<synchronous>, transform_indices = @transform_3, window_bounds = array<i64: 16, 1>}, {pipeline_mode = #tpu.pipeline_mode<synchronous>, transform_indices = @transform_4, window_bounds = array<i64: 16, 1>}, {transform_indices = @transform_5, window_bounds = array<i64: 1, 1, 16, 32>}]} {
    %c0_i32 = arith.constant 0 : i32
    %0 = arith.cmpi eq, %arg2, %c0_i32 : i32
    %1 = arith.extui %0 : i1 to i32
    %c0_i32_0 = arith.constant 0 : i32
    %2 = arith.cmpi ne, %1, %c0_i32_0 : i32
    scf.if %2 {
      %cst_29 = arith.constant 0.000000e+00 : f32
      %44 = vector.broadcast %cst_29 : f32 to vector<1x1x16x32xf32>
      %c0_30 = arith.constant 0 : index
      %c0_31 = arith.constant 0 : index
      %c0_32 = arith.constant 0 : index
      %c0_33 = arith.constant 0 : index
      %45 = vector.load %arg8[%c0_30, %c0_31, %c0_32, %c0_33] : memref<1x1x16x32xf32, #tpu.memory_space<vmem>>, vector<1x1x16x32xf32>
      tpu.vector_store %arg8[%c0_30, %c0_31, %c0_32, %c0_33], %44 {strides = array<i32>} : memref<1x1x16x32xf32, #tpu.memory_space<vmem>>, vector<1x1x16x32xf32>,
      %cst_34 = arith.constant 0.000000e+00 : f32
      %46 = vector.broadcast %cst_34 : f32 to vector<16x1xf32>
      %c0_35 = arith.constant 0 : index
      %c0_36 = arith.constant 0 : index
      %47 = vector.load %arg9[%c0_35, %c0_36] : memref<16x1xf32, #tpu.memory_space<vmem>>, vector<16x1xf32>
      tpu.vector_store %arg9[%c0_35, %c0_36], %46 {strides = array<i32>} : memref<16x1xf32, #tpu.memory_space<vmem>>, vector<16x1xf32>,
    } else {
    }
    %c0 = arith.constant 0 : index
    %c0_1 = arith.constant 0 : index
    %c0_2 = arith.constant 0 : index
    %3 = vector.load %arg3[%c0, %c0_1, %c0_2] : memref<1x32x64xf32, #tpu.memory_space<vmem>>, vector<1x32x64xf32>
    %4 = vector.shape_cast %3 : vector<1x32x64xf32> to vector<32x64xf32>
    %5 = arith.mulf %4, %4 : vector<32x64xf32>
    %cst = arith.constant dense<0.000000e+00> : vector<64xf32>
    %6 = vector.multi_reduction <add>, %5, %cst [0] : vector<32x64xf32> to vector<64xf32>
    %7 = vector.shape_cast %6 : vector<64xf32> to vector<1x64xf32>
    %c0_3 = arith.constant 0 : index
    %c0_4 = arith.constant 0 : index
    %8 = vector.load %arg4[%c0_3, %c0_4] : memref<16x32xf32, #tpu.memory_space<vmem>>, vector<16x32xf32>
    %cst_5 = arith.constant dense<0.000000e+00> : vector<16x64xf32>
    %9 = tpu.matmul %8, %4, %cst_5 {dimension_numbers = #tpu.dot_dimension_numbers<[1], [0], [0], [1], [0, 0, 1, 1], [], []>} : vector<16x32xf32>, vector<32x64xf32>, vector<16x64xf32> -> vector<16x64xf32>
    %c0_6 = arith.constant 0 : index
    %c0_7 = arith.constant 0 : index
    %10 = vector.load %arg6[%c0_6, %c0_7] : memref<16x1xf32, #tpu.memory_space<vmem>>, vector<16x1xf32>
    %11 = vector.broadcast %10 : vector<16x1xf32> to vector<16x64xf32>
    %12 = vector.broadcast %7 : vector<1x64xf32> to vector<16x64xf32>
    %13 = arith.mulf %11, %12 : vector<16x64xf32>
    %14 = arith.subf %13, %9 : vector<16x64xf32>
    %c0_8 = arith.constant 0 : index
    %c0_9 = arith.constant 0 : index
    %15 = vector.load %arg7[%c0_8, %c0_9] : memref<16x1xf32, #tpu.memory_space<vmem>>, vector<16x1xf32>
    %16 = vector.broadcast %15 : vector<16x1xf32> to vector<16x64xf32>
    %17 = arith.addf %14, %16 : vector<16x64xf32>
    %cst_10 = arith.constant dense<0xFF800000> : vector<64xf32>
    %18 = vector.multi_reduction <maximumf>, %17, %cst_10 [0] : vector<16x64xf32> to vector<64xf32>
    %19 = vector.shape_cast %18 : vector<64xf32> to vector<1x64xf32>
    %20 = vector.broadcast %19 : vector<1x64xf32> to vector<16x64xf32>
    %21 = arith.subf %17, %20 : vector<16x64xf32>
    %22 = math.exp %21 : vector<16x64xf32>
    %cst_11 = arith.constant dense<0.000000e+00> : vector<64xf32>
    %23 = vector.multi_reduction <add>, %22, %cst_11 [0] : vector<16x64xf32> to vector<64xf32>
    %24 = vector.shape_cast %23 : vector<64xf32> to vector<1x64xf32>
    %cst_12 = arith.constant 1.000000e+00 : f32
    %25 = vector.broadcast %cst_12 : f32 to vector<1x64xf32>
    %26 = arith.divf %25, %24 : vector<1x64xf32>
    %27 = vector.broadcast %26 : vector<1x64xf32> to vector<16x64xf32>
    %28 = arith.mulf %22, %27 : vector<16x64xf32>
    %c0_13 = arith.constant 0 : index
    %c0_14 = arith.constant 0 : index
    %c0_15 = arith.constant 0 : index
    %c0_16 = arith.constant 0 : index
    %29 = vector.load %arg8[%c0_13, %c0_14, %c0_15, %c0_16] : memref<1x1x16x32xf32, #tpu.memory_space<vmem>>, vector<1x1x16x32xf32>
    %30 = vector.shape_cast %29 : vector<1x1x16x32xf32> to vector<16x32xf32>
    %cst_17 = arith.constant dense<0.000000e+00> : vector<16x32xf32>
    %31 = tpu.matmul %28, %4, %cst_17 {dimension_numbers = #tpu.dot_dimension_numbers<[1], [1], [0], [0], [0, 0, 1, 0], [], []>} : vector<16x64xf32>, vector<32x64xf32>, vector<16x32xf32> -> vector<16x32xf32>
    %32 = arith.addf %30, %31 : vector<16x32xf32>
    %c0_18 = arith.constant 0 : index
    %c0_19 = arith.constant 0 : index
    %c0_20 = arith.constant 0 : index
    %c0_21 = arith.constant 0 : index
    %33 = vector.load %arg8[%c0_18, %c0_19, %c0_20, %c0_21] : memref<1x1x16x32xf32, #tpu.memory_space<vmem>>, vector<1x1x16x32xf32>
    %34 = vector.shape_cast %33 : vector<1x1x16x32xf32> to vector<16x32xf32>
    %35 = vector.shape_cast %32 : vector<16x32xf32> to vector<1x1x16x32xf32>
    tpu.vector_store %arg8[%c0_18, %c0_19, %c0_20, %c0_21], %35 {strides = array<i32>} : memref<1x1x16x32xf32, #tpu.memory_space<vmem>>, vector<1x1x16x32xf32>,
    %c0_22 = arith.constant 0 : index
    %c0_23 = arith.constant 0 : index
    %36 = vector.load %arg9[%c0_22, %c0_23] : memref<16x1xf32, #tpu.memory_space<vmem>>, vector<16x1xf32>
    %cst_24 = arith.constant dense<0.000000e+00> : vector<16xf32>
    %37 = vector.multi_reduction <add>, %28, %cst_24 [1] : vector<16x64xf32> to vector<16xf32>
    %38 = vector.shape_cast %37 : vector<16xf32> to vector<16x1xf32>
    %39 = arith.addf %36, %38 : vector<16x1xf32>
    %c0_25 = arith.constant 0 : index
    %c0_26 = arith.constant 0 : index
    %40 = vector.load %arg9[%c0_25, %c0_26] : memref<16x1xf32, #tpu.memory_space<vmem>>, vector<16x1xf32>
    tpu.vector_store %arg9[%c0_25, %c0_26], %39 {strides = array<i32>} : memref<16x1xf32, #tpu.memory_space<vmem>>, vector<16x1xf32>,
    %c0_i32_27 = arith.constant 0 : i32
    %41 = arith.cmpi eq, %arg2, %c0_i32_27 : i32
    %42 = arith.extui %41 : i1 to i32
    %c0_i32_28 = arith.constant 0 : i32
    %43 = arith.cmpi ne, %42, %c0_i32_28 : i32
    scf.if %43 {
      %c0_29 = arith.constant 0 : index
      %c0_30 = arith.constant 0 : index
      %c0_31 = arith.constant 0 : index
      %c0_32 = arith.constant 0 : index
      %44 = vector.load %arg8[%c0_29, %c0_30, %c0_31, %c0_32] : memref<1x1x16x32xf32, #tpu.memory_space<vmem>>, vector<1x1x16x32xf32>
      %45 = vector.shape_cast %44 : vector<1x1x16x32xf32> to vector<16x32xf32>
      %c0_33 = arith.constant 0 : index
      %c0_34 = arith.constant 0 : index
      %46 = vector.load %arg9[%c0_33, %c0_34] : memref<16x1xf32, #tpu.memory_space<vmem>>, vector<16x1xf32>
      %c0_35 = arith.constant 0 : index
      %c0_36 = arith.constant 0 : index
      %47 = vector.load %arg5[%c0_35, %c0_36] : memref<16x32xf32, #tpu.memory_space<vmem>>, vector<16x32xf32>
      %48 = vector.broadcast %46 : vector<16x1xf32> to vector<16x32xf32>
      %49 = arith.mulf %48, %47 : vector<16x32xf32>
      %50 = arith.subf %45, %49 : vector<16x32xf32>
      %c0_37 = arith.constant 0 : index
      %c0_38 = arith.constant 0 : index
      %c0_39 = arith.constant 0 : index
      %c0_40 = arith.constant 0 : index
      %51 = vector.load %arg8[%c0_37, %c0_38, %c0_39, %c0_40] : memref<1x1x16x32xf32, #tpu.memory_space<vmem>>, vector<1x1x16x32xf32>
      %52 = vector.shape_cast %51 : vector<1x1x16x32xf32> to vector<16x32xf32>
      %53 = vector.shape_cast %50 : vector<16x32xf32> to vector<1x1x16x32xf32>
      tpu.vector_store %arg8[%c0_37, %c0_38, %c0_39, %c0_40], %53 {strides = array<i32>} : memref<1x1x16x32xf32, #tpu.memory_space<vmem>>, vector<1x1x16x32xf32>,
    } else {
    }
    return
  }
  func.func @transform_0(%arg0: i32, %arg1: i32, %arg2: i32) -> (i32, i32, i32) {
    %c1_i32 = arith.constant 1 : i32
    %0 = arith.muli %arg1, %c1_i32 : i32
    %1 = arith.addi %0, %arg2 : i32
    %c0_i32 = arith.constant 0 : i32
    %c0_i32_0 = arith.constant 0 : i32
    return %arg0, %c0_i32, %1 : i32, i32, i32
  }
  func.func @transform_1(%arg0: i32, %arg1: i32, %arg2: i32) -> (i32, i32) {
    %c0_i32 = arith.constant 0 : i32
    %c0_i32_0 = arith.constant 0 : i32
    %c0_i32_1 = arith.constant 0 : i32
    return %c0_i32, %c0_i32_0 : i32, i32
  }
  func.func @transform_2(%arg0: i32, %arg1: i32, %arg2: i32) -> (i32, i32) {
    %c0_i32 = arith.constant 0 : i32
    %c0_i32_0 = arith.constant 0 : i32
    %c0_i32_1 = arith.constant 0 : i32
    return %c0_i32, %c0_i32_0 : i32, i32
  }
  func.func @transform_3(%arg0: i32, %arg1: i32, %arg2: i32) -> (i32, i32) {
    %c0_i32 = arith.constant 0 : i32
    %c0_i32_0 = arith.constant 0 : i32
    %c0_i32_1 = arith.constant 0 : i32
    return %c0_i32, %c0_i32_0 : i32, i32
  }
  func.func @transform_4(%arg0: i32, %arg1: i32, %arg2: i32) -> (i32, i32) {
    %c0_i32 = arith.constant 0 : i32
    %c0_i32_0 = arith.constant 0 : i32
    %c0_i32_1 = arith.constant 0 : i32
    return %c0_i32, %c0_i32_0 : i32, i32
  }
  func.func @transform_5(%arg0: i32, %arg1: i32, %arg2: i32) -> (i32, i32, i32, i32) {
    %c0_i32 = arith.constant 0 : i32
    %c0_i32_0 = arith.constant 0 : i32
    %c0_i32_1 = arith.constant 0 : i32
    return %arg0, %arg1, %c0_i32, %c0_i32_0 : i32, i32, i32, i32
  }
}

</mosaic_0001>

<bundles_post_ra>
// kernel: tpu_custom_call.1
= control target key start
LH: loop header
LB: loop body
LE: loop exit
PB: predicated region body
PF: predicated region fallthrough
CT: control target
= control target key end

     0   :  { %10 = vsyncpa [#allocation4], 0  ;;  %s1050_s0 = inlined_call_operand.hbm [shape: f32[2,32,64], index: 0, kind: input, shape index: {}]   ;;  %s1051_s1 = inlined_call_operand.vmem [shape: f32[16,32], index: 1, kind: input, shape index: {}]   ;;  %s1052_s2 = inlined_call_operand.vmem [shape: f32[16,32], index: 2, kind: input, shape index: {}]   ;;  %s1053_s3 = inlined_call_operand.vmem [shape: f32[16,1], index: 3, kind: input, shape index: {}]   ;;  %s1054_s4 = inlined_call_operand.vmem [shape: f32[16,1], index: 4, kind: input, shape index: {}]   ;;  %s1055_s5 = inlined_call_operand.hbm [shape: f32[2,1,16,32], index: 5, kind: output, shape index: {}]  }
   0x1   :  { %12 = vsyncpa [#allocation4 + $0x1], 0 }
   0x2   :  { %13 = vsyncpa [#allocation5], 0 }
   0x3   :  { %15 = vsyncpa [#allocation5 + $0x1], 0  ;;  %s860_s18 = smov 0   ;;  %s862_s19 = smov 0  }
   0x4   :  { %s864_s20 = smov 0   ;;  %s866_s21 = smov 0  }
   0x5   :  { %s868_s22 = smov 0   ;;  %s870_s23 = smov 0  }
   0x6 LB: > { %s601_s24 = sadd.s32 4294967295, %s822_s23   ;;  %s602_s25 = sadd.s32 4294967294, %s822_s23   ;;  %s822_s23 = sphi %s870_s23, %s21_s23   ;;  %s818_s22 = sphi %s868_s22, %s1064_s22   ;;  %s814_s21 = sphi %s866_s21, %s1063_s21   ;;  %s810_s20 = sphi %s864_s20, %s1062_s20   ;;  %s806_s19 = sphi %s862_s19, %s1061_s19   ;;  %s802_s18 = sphi %s860_s18, %s1060_s18  }
   0x7   : > { %s40_s26 = sadd.s32 1, %s818_s22  ;;  %s51_s27 = sadd.s32 1, %s810_s20 }
   0x8   : > { %p42_p0 = scmp.ge.s32.totalorder %s40_s26, 2  ;;  %p58_p1 = scmp.ne.s32.totalorder %s810_s20, %s806_s19 }
   0x9   : > { %p59_p2 = scmp.eq.s32.totalorder %s822_s23, 0  ;;  %p64_p3 = scmp.ne.s32.totalorder %s806_s19, %s802_s18 }
   0xa   : > { %s1066_s26 = smov (%p42_p0, %s40_s26), 0  ;;  %p65_p5 = scmp.eq.s32.totalorder %s601_s24, 0 }
   0xb   : > { %p901_p4 = por %p59_p2, %p58_p1  ;;  %s46_s29 = ssub.s32 %s818_s22, %s1066_s26 }
   0xc   : > { %p174_p6 = scmp.eq.s32.totalorder %s601_s24, 1  ;;  %p49_p7 = scmp.eq.s32.totalorder %s46_s29, 0 }
   0xd   : > { %p907_p8 = por %p65_p5, %p64_p3  ;;  %p180_p10 = scmp.eq.s32.totalorder %s602_s25, 1 }
   0xe   : > { %p911_p9 = por %p174_p6, %p58_p1  ;;  %p604_p12 = scmp.ge.s32.totalorder %s822_s23, 2 }
   0xf   : > { %s916_s7 = scalar_select %p49_p7, %s810_s20, %s51_s27  }
  0x10   : > { %p918_p11 = por %p180_p10, %p64_p3  ;;  %p646_p13 = scmp.lt.s32.totalorder %s822_s23, 2 }
  0x11   : > { %s212_s9 = sand.u32 1, %s810_s20   ;;  %s624_s11 = sshll.u32 %s818_s22, 5 }
  0x12   : > { %s605_s10 = sshll.u32 %s212_s9, 5  ;;  %s223_s14 = scalar_lea.hbm %s1050_s0, %s624_s11 }
  0x13   : > { %s216_s15 = scalar_lea.vmem [#allocation3], %s605_s10  ;;  %s224_s17 = sshll.u32 %s223_s14, 4  ;;  %s225_s17 = int_to_ptr.hbm [resolvable:$true] %s224_s17 }
  0x14   : > { %s226_s16 = sshll.u32 %s216_s15, 4  ;;  %p639_p0 = pnand %p646_p13, %p901_p4  ;;  %s227_s16 = int_to_ptr.vmem [resolvable:$true] %s226_s16 }
  0x15   : > { %p608_p1 = scmp.ge.s32.totalorder %s822_s23, 1  ;;  %s213_s24 = scalar_lea.sflag [#allocation4], %s212_s9 }
  0x16   : > { %s824_s25 = smov 128   ;;  %s825_s27 = smov 8  }
  0x17   : > { %641 = dma.hbm_to_vmem [thread:$0]  (!%p639_p0), %s225_s17, 512, %s227_s16, %s213_s24, %s824_s25, %s824_s25, %s825_s27  }
  0x18   : > { %p234_p2 = scmp.lt.s32.totalorder %s822_s23, 3 }
  0x1a   : > { %p235_p3 = pnand %p608_p1, %p234_p2 }
  0x1b   : > { %s934_s29 = sand.u32 (!%p235_p3), 1, %s806_s19  }
  0x1c   : > { %238 = sbr.rel (%p235_p3) target bundleno = 498 (0x1f2), region = 40  ;;  %s609_s10 = sshll.u32 (!%p235_p3), %s934_s29, 5 }
  0x1d   : > { %s241_s11 = scalar_lea.sflag (!%p235_p3), [#allocation4], %s934_s29  ;;  %s244_s12 = scalar_lea.vmem (!%p235_p3), [#allocation3], %s609_s10 }
  0x21   : > { %793 = dma.done.wait (%p907_p8), %s241_s11, 512  }
  0x22   : > { %795 = vsyncadd (%p907_p8), %s241_s11, 4294966784  ;;  %v826_v0 = vmov 0   ;;  %v286_v1 = vld [vmem:[%s244_s12 + $0x18] sm:$0xff]  ;;  %v285_v2 = vld [vmem:[%s244_s12 + $0x10] sm:$0xff]  ;;  %vm291_vm0 = vcmask 523264   ;;  %vm277_vm1 = vcmask 261120  }
  0x23   : > { %702 = vset.pattern.permute.xlu0 %v826_v0  ;;  %703 = vset.pattern.permute.xlu1 %v826_v0  ;;  %v337_v3 = vld [vmem:[%s1053_s3] sm:$0xff]  ;;  %v284_v4 = vld [vmem:[%s244_s12 + $0x8] sm:$0xff]  ;;  %v283_v6 = vld [vmem:[%s244_s12] sm:$0xff]  ;;  %v289_v13 = vmul.f32 %v285_v2, %v285_v2  ;;  %v290_v19 = vmul.f32 %v286_v1, %v286_v1  ;;  %vm280_vm2 = vcmask 7168   ;;  %v827_v63 = vmov 0.0   ;;  %s610_s11 = sshll.u32 %s934_s29, 4 }
  0x24   : > { %326 = vmatpush.msra.mxu0 %v286_v1  ;;  %626 = vmatpush.msra.mxu3 %v286_v1  ;;  %v353_v5 = vld [vmem:[%s1054_s4] sm:$0xff]  ;;  %v306_v8 = vld [vmem:[%s1051_s1 + $0x8] sm:$0xff]  ;;  %v288_v11 = vmul.f32 %v284_v4, %v284_v4  ;;  %v287_v12 = vmul.f32 %v283_v6, %v283_v6  ;;  %281 = vst.msk [vmem:[#allocation2] sm:$0xff] %vm280_vm2, %v827_v63  ;;  %s981_s12 = scalar_lea.vmem [#allocation6], %s610_s11  ;;  %s625_s13 = sshll.u32 %s814_s21, 4 }
  0x25   : > { %341 = vperm.xlu0 %702, %v337_v3   ;;  %613 = vmatpush.xpose.msk.msra.mxu1 %vm291_vm0, %v286_v1  ;;  %v305_v7 = vld [vmem:[%s1051_s1] sm:$0xff]  ;;  %v338_v9 = vld [vmem:[%s1053_s3 + $0x8] sm:$0xff]  ;;  %v295_v17 = vsel %vm291_vm0, %v289_v13, 0.0  ;;  %v297_v20 = vsel %vm291_vm0, %v290_v19, 0.0  ;;  %282 = vst.msk [vmem:[#allocation2 + $0x8] sm:$0xff] %vm280_vm2, %v827_v63  ;;  %s507_s15 = scalar_lea.hbm %s1055_s5, %s625_s13  ;;  %s508_s24 = sshll.u32 %s981_s12, 4  ;;  %s509_s24 = int_to_ptr.vmem [resolvable:$true] %s508_s24 }
  0x26   : > { %327 = vmatpush.msra.mxu0 %v285_v2  ;;  %627 = vmatpush.msra.mxu3 %v285_v2  ;;  %v354_v10 = vld [vmem:[%s1054_s4 + $0x8] sm:$0xff]  ;;  %v292_v14 = vsel %vm291_vm0, %v287_v12, 0.0  ;;  %v293_v15 = vsel %vm291_vm0, %v288_v11, 0.0  ;;  %278 = vst.msk [vmem:[%s981_s12] sm:$0xff] %vm277_vm1, %v827_v63  ;;  %s510_s25 = sshll.u32 %s507_s15, 4  ;;  %s494_s21 = scalar_lea.sflag [#allocation5], %s934_s29  ;;  %s511_s25 = int_to_ptr.hbm [resolvable:$true] %s510_s25 }
  0x27   : > { %357 = vperm.xlu1 %703, %v353_v5   ;;  %630 = vmatpush.xpose.msk.msra.mxu2 %vm291_vm0, %v286_v1  ;;  %v294_v16 = vadd.f32 %v293_v15, %v292_v14  ;;  %279 = vst.msk [vmem:[%s981_s12 + $0x8] sm:$0xff] %vm277_vm1, %v827_v63  ;;  %s754_s27 = sshra.s32 %s511_s25, 4  ;;  %s760_s9 = scalar_lea.hbm %s1055_s5, 32  ;;  %s755_s27 = int_to_ptr.hbm [resolvable:$true] %s754_s27 }
  0x28   : > { %328 = vmatpush.msra.mxu0 %v284_v4  ;;  %628 = vmatpush.msra.mxu3 %v284_v4  ;;  %s756_s10 = scalar_lea.hbm %s755_s27, 16  ;;  %p761_p7 = scmp.lt.s32.totalorder %s755_s27, %s1055_s5 }
  0x29   : > { %614 = vmatpush.xpose.msk.msra.mxu1 %vm291_vm0, %v285_v2  ;;  %v296_v18 = vadd.f32 %v295_v17, %v294_v16  ;;  %p757_p4 = scmp.ne.s32.totalorder %s755_s27, %s756_s10  ;;  %p762_p8 = scmp.lt.s32.totalorder %s760_s9, %s756_s10 }
  0x2a   : > { %329 = vmatpush.msra.mxu0 %v283_v6  ;;  %629 = vmatpush.msra.mxu3 %v283_v6 }
  0x2b   : > { %611 = vmatmul.msk.f32.vlgmr.msra.gmra.mxu0 %vm277_vm1, %v305_v7  ;;  %612 = vmatmul.msk.f32.vlgmr.msra.gmra.mxu3 %vm277_vm1, %v306_v8  ;;  %v298_v21 = vadd.f32 %v297_v20, %v296_v18  ;;  %v455_v15 = vld [vmem:[#allocation2] sm:$0xff]  ;;  %p758_p5 = pnand %p757_p4, %p911_p9  ;;  %p763_p10 = por %p762_p8, %p761_p7 }
  0x2c   : > { %631 = vmatpush.xpose.msk.msra.mxu2 %vm291_vm0, %v285_v2  ;;  %v456_v18 = vld [vmem:[#allocation2 + $0x8] sm:$0xff] }
  0x2d   : > { %346 = vperm.xlu0 %702, %v338_v9   ;;  %615 = vmatpush.xpose.msk.msra.mxu1 %vm291_vm0, %v284_v4  ;;  %v299_v22 = vrot.slane %v298_v21, 4  ;;  %v408_v19 = vld [vmem:[%s981_s12] sm:$0xff]  ;;  %p759_p6 = pneg %p758_p5 }
  0x2f   : > { %362 = vperm.xlu1 %703, %v354_v10   ;;  %v300_v23 = vadd.f32 %v299_v22, %v298_v21  ;;  %p764_p13 = pnand %p763_p10, %p759_p6 }
  0x30   : > { %632 = vmatpush.xpose.msk.msra.mxu2 %vm291_vm0, %v284_v4 }
  0x31   : > { %616 = vmatpush.xpose.msk.msra.mxu1 %vm291_vm0, %v283_v6  ;;  %v301_v24 = vrot.slane %v300_v23, 2 }
  0x33   : > { %v302_v25 = vadd.f32 %v301_v24, %v300_v23 }
  0x34   : > { %633 = vmatpush.xpose.msk.msra.mxu2 %vm291_vm0, %v283_v6 }
  0x35   : > { %v303_v27 = vrot.slane %v302_v25, 1 }
  0x37   : > { %v304_v28 = vadd.f32 %v303_v27, %v302_v25  ;;  %v409_v25 = vld [vmem:[%s981_s12 + $0x8] sm:$0xff] }
  0x97   : > { %v342_v26 = vpop.permute.xlu0 %341 }
  0x98   : > { %v349_v31 = vmul.f32 %v342_v26, %v304_v28 }
  0x99   : > { %v358_v29 = vpop.permute.xlu1 %357 }
  0x9f   : > { %v347_v32 = vpop.permute.xlu0 %346 }
  0xa0   : > { %v350_v34 = vmul.f32 %v347_v32, %v304_v28 }
  0xa1   : > { %v363_v38 = vpop.permute.xlu1 %362 }
  0xa8   : > { %v331_v30 = vpop.f32.mrf.mxu0 }
  0xa9   : > { %v351_v33 = vsub.f32 %v349_v31, %v331_v30 }
  0xab   : > { %v365_v36 = vadd.f32 %v358_v29, %v351_v33  ;;  %v475_v29 = vld [vmem:[%s1052_s2] sm:$0xff] }
  0xad   : > { %v367_v40 = vsel %vm291_vm0, %v365_v36, -inf }
  0xae   : > { %v334_v35 = vpop.f32.mrf.mxu3 }
  0xaf   : > { %v352_v37 = vsub.f32 %v350_v34, %v334_v35  ;;  %v476_v34 = vld [vmem:[%s1052_s2 + $0x8] sm:$0xff] }
  0xb1   : > { %v366_v39 = vadd.f32 %v363_v38, %v352_v37 }
  0xb3   : > { %v368_v41 = vsel %vm291_vm0, %v366_v39, -inf }
  0xb4   : > { %v369_v42 = vmax.f32 %v367_v40, %v368_v41 }
  0xb6   : > { %v370_v43 = vrot.slane %v369_v42, 4 }
  0xb8   : > { %v371_v44 = vmax.f32 %v369_v42, %v370_v43 }
  0xba   : > { %v372_v45 = vrot.slane %v371_v44, 2 }
  0xbc   : > { %v373_v46 = vmax.f32 %v371_v44, %v372_v45 }
  0xbe   : > { %v374_v47 = vrot.slane %v373_v46, 1 }
  0xc0   : > { %v375_v48 = vmax.f32 %v373_v46, %v374_v47 }
  0xc2   : > { %v376_v49 = vsub.f32 %v365_v36, %v375_v48  ;;  %v377_v50 = vsub.f32 %v366_v39, %v375_v48 }
  0xc4   : > { %v378_v51 = vmul.f32 1.442695, %v376_v49  ;;  %v380_v52 = vmul.f32 1.442695, %v377_v50 }
  0xc6   : > { %704 = vpow2.f32 %v378_v51 }
  0xc7   : > { %706 = vpow2.f32 %v380_v52 }
  0xcc   : > { %v705_v53 = vpop.eup %704 }
  0xcd   : > { %v707_v54 = vpop.eup %706  ;;  %v382_v55 = vsel %vm291_vm0, %v705_v53, 0.0 }
  0xce   : > { %v383_v56 = vsel %vm291_vm0, %v707_v54, 0.0 }
  0xcf   : > { %v384_v57 = vadd.f32 %v383_v56, %v382_v55 }
  0xd1   : > { %v385_v58 = vrot.slane %v384_v57, 4 }
  0xd3   : > { %v386_v59 = vadd.f32 %v385_v58, %v384_v57 }
  0xd5   : > { %v387_v60 = vrot.slane %v386_v59, 2 }
  0xd7   : > { %v388_v61 = vadd.f32 %v387_v60, %v386_v59 }
  0xd9   : > { %v389_v62 = vrot.slane %v388_v61, 1 }
  0xdb   : > { %v390_v0 = vadd.f32 %v389_v62, %v388_v61 }
  0xdd   : > { %708 = vrcp.f32 %v390_v0  ;;  %v402_v4 = vand.u32 2147483648, %v390_v0  ;;  %v400_v6 = vand.u32 2147483647, %v390_v0  ;;  %vm396_vm4 = vweird.f32 %v390_v0 }
  0xdf   : > { %v403_v8 = vor.u32 1.1754944e-38, %v402_v4  ;;  %vm401_vm6 = vcmp.eq.f32.partialorder %v400_v6, 8.507059e+37 }
  0xe3   : > { %v709_v1 = vpop.eup %708 }
  0xe4   : > { %v392_v2 = vmul.f32 %v709_v1, %v390_v0  ;;  %vm397_vm3 = vweird.f32 %v709_v1 }
  0xe5   : > { %vm398_vm5 = vmor %vm396_vm4, %vm397_vm3 }
  0xe6   : > { %v393_v3 = vsub.f32 1.0, %v392_v2 }
  0xe8   : > { %v394_v5 = vmul.f32 %v709_v1, %v393_v3 }
  0xea   : > { %v395_v7 = vadd.f32 %v709_v1, %v394_v5 }
  0xec   : > { %v399_v9 = vsel %vm398_vm5, %v709_v1, %v395_v7 }
  0xed   : > { %v404_v10 = vsel %vm401_vm6, %v403_v8, %v399_v9 }
  0xee   : > { %v406_v11 = vmul.f32 %v705_v53, %v404_v10  ;;  %v407_v12 = vmul.f32 %v707_v54, %v404_v10 }
  0xf0   : > { %617 = vmatmul.msk.f32.vlgmr.msra.gmra.mxu1 %vm291_vm0, %v406_v11  ;;  %618 = vmatmul.msk.f32.vlgmr.msra.gmra.mxu2 %vm291_vm0, %v407_v12  ;;  %v457_v13 = vsel %vm291_vm0, %v406_v11, 0.0  ;;  %v460_v14 = vsel %vm291_vm0, %v407_v12, 0.0 }
  0xf1   : > { %458 = vadd.xlane.f32.xlu2 %v457_v13 }
  0xf9   : > { %461 = vadd.xlane.f32.xlu2 %v460_v14 }
 0x164   : > { %v459_v16 = vpop.xlane.xlu2 %458 }
 0x165   : > { %v463_v17 = vadd.f32 %v459_v16, %v455_v15 }
 0x167   : > { %466 = vst.msk [vmem:[#allocation2] sm:$0xff] %vm280_vm2, %v463_v17 }
 0x16c   : > { %v462_v20 = vpop.xlane.xlu2 %461 }
 0x16d   : > { %v464_v21 = vadd.f32 %v462_v20, %v456_v18  ;;  %v445_v22 = vpop.f32.mrf.mxu1 }
 0x16e   : > { %v451_v23 = vadd.f32 %v445_v22, %v408_v19  ;;  %v473_v24 = vld [vmem:[#allocation2] sm:$0xff] }
 0x16f   : > { %467 = vst.msk [vmem:[#allocation2 + $0x8] sm:$0xff] %vm280_vm2, %v464_v21  ;;  %479 = vperm.xlu0 %702, %v473_v24  }
 0x170   : > { %453 = vst.msk [vmem:[%s981_s12] sm:$0xff] %vm277_vm1, %v451_v23 }
 0x173   : > { %v448_v26 = vpop.f32.mrf.mxu2 }
 0x174   : > { %v452_v27 = vadd.f32 %v448_v26, %v409_v25 }
 0x176   : > { %454 = vst.msk [vmem:[%s981_s12 + $0x8] sm:$0xff] %vm277_vm1, %v452_v27  ;;  %v474_v28 = vld [vmem:[#allocation2 + $0x8] sm:$0xff] }
 0x177   : > { %484 = vperm.xlu1 %703, %v474_v28   ;;  %v471_v32 = vld [vmem:[%s981_s12] sm:$0xff] }
 0x17d   : > { %v472_v37 = vld [vmem:[%s981_s12 + $0x8] sm:$0xff] }
 0x1e1   : > { %v480_v30 = vpop.permute.xlu0 %479 }
 0x1e2   : > { %v487_v31 = vmul.f32 %v480_v30, %v475_v29 }
 0x1e4   : > { %v489_v33 = vsub.f32 %v471_v32, %v487_v31 }
 0x1e6   : > { %491 = vst.msk [vmem:[%s981_s12] sm:$0xff] %vm277_vm1, %v489_v33 }
 0x1e9   : > { %v485_v35 = vpop.permute.xlu1 %484 }
 0x1ea   : > { %v488_v36 = vmul.f32 %v485_v35, %v476_v34 }
 0x1ec   : > { %v490_v38 = vsub.f32 %v472_v37, %v488_v36 }
 0x1ee   : > { %492 = vst.msk [vmem:[%s981_s12 + $0x8] sm:$0xff] %vm277_vm1, %v490_v38 }
 0x1ef   : > { %767 = shalt.err (!%p764_p13)
}
 0x1f0   : > { %s828_s29 = smov 128   ;;  %s829_s12 = smov 8  }
 0x1f1   : > { %636 = dma.vmem_to_hbm [thread:$0]  (%p911_p9), %s509_s24, 256, %s511_s25, %s494_s21, %s828_s29, %s828_s29, %s829_s12  }
 0x1f2 PF: > { %s525_s30 = sand.u32 1, %s802_s18   ;;  %p643_p0 = pnand %p604_p12, %p918_p11 }
 0x1f3   : > { %s526_s15 = scalar_lea.sflag [#allocation5], %s525_s30 }
 0x1f4   : > { %p644_p1 = pneg %p643_p0 }
 0x1f6   : > { %797 = dma.done.wait (%p644_p1), %s526_s15, 256  }
 0x1f7   : > { %799 = vsyncadd (%p644_p1), %s526_s15, 4294967040  ;;  %s21_s23 = sadd.s32 1, %s822_s23   ;;  %s1060_s18 = smov %s806_s19 }
 0x1f8   : > { %p18_p2 = scmp.ge.s32.totalorder %s21_s23, 4   ;;  %s1061_s19 = smov %s810_s20 }
 0x1f9   : > { %s1062_s20 = smov %s916_s7  ;;  %s1063_s21 = smov %s818_s22 }
 0x1fa   : > { %s1064_s22 = smov %s1066_s26  ;;  %20 = sbr.rel (!%p18_p2) target bundleno = 6 (0x6), region = 93 }
 0x1ff   :  { %532 = vsyncpa [#allocation4], 1 }
 0x200   :  { %534 = vsyncpa [#allocation4 + $0x1], 1 }
 0x201   :  { %535 = vsyncpa [#allocation5], 1 }
 0x202   :  { %537 = vsyncpa [#allocation5 + $0x1], 1 }

</bundles_post_ra>
